<compile_context>
chip_gen: v5e
topology: v5e:2x2
jax: 0.10.0
libtpu: 0.0.40
codegen_flags: <defaults>
</compile_context>

<pallas_src>
import math
import functools

import jax
import jax.numpy as jnp
from jax.experimental import pallas as pl
from jax.experimental.pallas import tpu as pltpu


def _round_up(x, m):
    return ((x + m - 1) // m) * m


def _fcn_fused_kernel(x_ref, w_ref, b_ref, o_ref):
    # (TILE_M, d) @ (d, n_fused) on the MXU, f32 accumulate, + broadcast bias.
    acc = jnp.dot(x_ref[...], w_ref[...], preferred_element_type=jnp.float32)
    o_ref[...] = (acc + b_ref[...]).astype(o_ref.dtype)


def _pick_tile_m(M, d_model, n_fused, itemsize, budget_bytes=24 << 20):
    """Largest multiple-of-8 tile (<=512) whose pipelined buffers fit the budget."""
    resident = (d_model + 1) * n_fused * 4  # fused W + bias (kept f32)
    tile_m = min(512, _round_up(M, 8))
    while tile_m > 8:
        # 2x input tiles + 2x output tiles (double-buffered) + resident weights.
        need = 2 * tile_m * (d_model + n_fused) * itemsize + resident
        if need <= budget_bytes:
            break
        tile_m -= 8
    return max(tile_m, 8)


@functools.partial(jax.jit, static_argnames=("n_args", "args_dim"))
def fcn_forward(out, w_cmd, b_cmd, w_args, b_args, n_args, args_dim):
    """out: (S, N, d_model); w_cmd: (d_model, n_commands); w_args: (d_model, n_args*args_dim).

    Returns (command_logits (S, N, n_commands), args_logits (S, N, n_args, args_dim)).
    """
    S, N, d_model = out.shape
    n_commands = w_cmd.shape[1]
    n_args_out = n_args * args_dim

    # ---- fuse the two heads into one lane-dense weight / bias ----
    cmd_pad = _round_up(n_commands, 128)
    w_cmd_p = jnp.pad(w_cmd, ((0, 0), (0, cmd_pad - n_commands)))
    b_cmd_p = jnp.pad(b_cmd, (0, cmd_pad - n_commands))
    w_fused = jnp.concatenate([w_cmd_p, w_args], axis=1)          # (d, cmd_pad + n_args_out)
    b_fused = jnp.concatenate([b_cmd_p, b_args]).reshape(1, -1)   # (1, n_fused)
    n_fused = cmd_pad + n_args_out                                # multiple of 128

    # ---- flatten tokens and pad M to a tile multiple ----
    M = S * N
    x = out.reshape(M, d_model)
    itemsize = jnp.dtype(out.dtype).itemsize
    tile_m = _pick_tile_m(M, d_model, n_fused, itemsize)
    m_pad = _round_up(M, tile_m)
    if m_pad != M:
        x = jnp.pad(x, ((0, m_pad - M), (0, 0)))

    grid = (m_pad // tile_m,)

    cost = pl.CostEstimate(
        flops=2 * m_pad * d_model * n_fused,
        transcendentals=0,
        bytes_accessed=(m_pad * d_model + d_model * n_fused
                        + n_fused + m_pad * n_fused) * itemsize,
    )

    fused_out = pl.pallas_call(
        _fcn_fused_kernel,
        out_shape=jax.ShapeDtypeStruct((m_pad, n_fused), out.dtype),
        grid_spec=pltpu.PrefetchScalarGridSpec(
            num_scalar_prefetch=0,
            grid=grid,
            in_specs=[
                pl.BlockSpec((tile_m, d_model), lambda i: (i, 0)),   # x: tiled over M
                pl.BlockSpec((d_model, n_fused), lambda i: (0, 0)),  # fused W: VMEM-resident
                pl.BlockSpec((1, n_fused), lambda i: (0, 0)),        # fused bias: VMEM-resident
            ],
            out_specs=pl.BlockSpec((tile_m, n_fused), lambda i: (i, 0)),
        ),
        compiler_params=pltpu.CompilerParams(
            dimension_semantics=("parallel",),
            vmem_limit_bytes=32 << 20,   # safe on v5e / v6e / v7x
        ),
        cost_estimate=cost,
    )(x, w_fused, b_fused)

    fused_out = fused_out[:M]
    command_logits = fused_out[:, :n_commands].reshape(S, N, n_commands)
    args_logits = fused_out[:, cmd_pad:].reshape(S, N, n_args, args_dim)
    return command_logits, args_logits


def init_fcn_params(key, d_model, n_commands, n_args, args_dim):
    """Deterministic nn.Linear-style init: U(-1/sqrt(fan_in), 1/sqrt(fan_in))."""
    k1, k2, k3, k4 = jax.random.split(key, 4)
    bound = 1.0 / math.sqrt(d_model)
    w_cmd = jax.random.uniform(k1, (d_model, n_commands), jnp.float32, -bound, bound)
    b_cmd = jax.random.uniform(k2, (n_commands,), jnp.float32, -bound, bound)
    w_args = jax.random.uniform(k3, (d_model, n_args * args_dim), jnp.float32, -bound, bound)
    b_args = jax.random.uniform(k4, (n_args * args_dim,), jnp.float32, -bound, bound)
    return w_cmd, b_cmd, w_args, b_args


if __name__ == "__main__":
    # Small shapes implied by the forward: out is (S, N, d_model).
    S, N, d_model = 8, 2, 32
    n_commands, n_args, args_dim = 6, 8, 256

    key = jax.random.PRNGKey(0)
    kx, kp = jax.random.split(key)
    out = jax.random.normal(kx, (S, N, d_model), dtype=jnp.float32)
    w_cmd, b_cmd, w_args, b_args = init_fcn_params(kp, d_model, n_commands, n_args, args_dim)

    command_logits, args_logits = fcn_forward(
        out, w_cmd, b_cmd, w_args, b_args, n_args, args_dim)
    jax.block_until_ready((command_logits, args_logits))

    # sanity check against plain-JAX reference
    ref_cmd = out @ w_cmd + b_cmd
    ref_args = (out.reshape(S * N, d_model) @ w_args + b_args).reshape(S, N, n_args, args_dim)
    assert command_logits.shape == (S, N, n_commands)
    assert args_logits.shape == (S, N, n_args, args_dim)
    assert jnp.allclose(command_logits, ref_cmd, atol=1e-4)
    assert jnp.allclose(args_logits, ref_args, atol=1e-4)

    print("KERNEL_OK")
</pallas_src>

<mosaic_0001>
module attributes {stable_mosaic.version = 11 : i64} {
  func.func @_fcn_fused_kernel(%arg0: i32, %arg1: memref<16x32xf32, #tpu.memory_space<vmem>>, %arg2: memref<32x2176xf32, #tpu.memory_space<vmem>>, %arg3: memref<1x2176xf32, #tpu.memory_space<vmem>>, %arg4: memref<16x2176xf32, #tpu.memory_space<vmem>>) attributes {dimension_semantics = [#tpu.dimension_semantics<parallel>], iteration_bounds = array<i64: 1>, scalar_prefetch = 0 : i64, scratch_operands = 0 : i64, tpu.core_type = #tpu.core_type<tc>, window_params = [{transform_indices = @transform_0, window_bounds = array<i64: 16, 32>}, {pipeline_mode = #tpu.pipeline_mode<synchronous>, transform_indices = @transform_1, window_bounds = array<i64: 32, 2176>}, {pipeline_mode = #tpu.pipeline_mode<synchronous>, transform_indices = @transform_2, window_bounds = array<i64: 1, 2176>}, {transform_indices = @transform_3, window_bounds = array<i64: 16, 2176>}]} {
    %c0 = arith.constant 0 : index
    %c0_0 = arith.constant 0 : index
    %0 = vector.load %arg1[%c0, %c0_0] : memref<16x32xf32, #tpu.memory_space<vmem>>, vector<16x32xf32>
    %c0_1 = arith.constant 0 : index
    %c0_2 = arith.constant 0 : index
    %1 = vector.load %arg2[%c0_1, %c0_2] : memref<32x2176xf32, #tpu.memory_space<vmem>>, vector<32x2176xf32>
    %cst = arith.constant dense<0.000000e+00> : vector<16x2176xf32>
    %2 = tpu.matmul %0, %1, %cst {dimension_numbers = #tpu.dot_dimension_numbers<[1], [0], [0], [1], [0, 0, 1, 1], [], []>} : vector<16x32xf32>, vector<32x2176xf32>, vector<16x2176xf32> -> vector<16x2176xf32>
    %c0_3 = arith.constant 0 : index
    %c0_4 = arith.constant 0 : index
    %3 = vector.load %arg3[%c0_3, %c0_4] : memref<1x2176xf32, #tpu.memory_space<vmem>>, vector<1x2176xf32>
    %4 = vector.broadcast %3 : vector<1x2176xf32> to vector<16x2176xf32>
    %5 = arith.addf %2, %4 : vector<16x2176xf32>
    %c0_5 = arith.constant 0 : index
    %c0_6 = arith.constant 0 : index
    %6 = vector.load %arg4[%c0_5, %c0_6] : memref<16x2176xf32, #tpu.memory_space<vmem>>, vector<16x2176xf32>
    tpu.vector_store %arg4[%c0_5, %c0_6], %5 {strides = array<i32>} : memref<16x2176xf32, #tpu.memory_space<vmem>>, vector<16x2176xf32>,
    return
  }
  func.func @transform_0(%arg0: i32) -> (i32, i32) {
    %c0_i32 = arith.constant 0 : i32
    %c0_i32_0 = arith.constant 0 : i32
    return %arg0, %c0_i32 : i32, i32
  }
  func.func @transform_1(%arg0: i32) -> (i32, i32) {
    %c0_i32 = arith.constant 0 : i32
    %c0_i32_0 = arith.constant 0 : i32
    %c0_i32_1 = arith.constant 0 : i32
    return %c0_i32, %c0_i32_0 : i32, i32
  }
  func.func @transform_2(%arg0: i32) -> (i32, i32) {
    %c0_i32 = arith.constant 0 : i32
    %c0_i32_0 = arith.constant 0 : i32
    %c0_i32_1 = arith.constant 0 : i32
    return %c0_i32, %c0_i32_0 : i32, i32
  }
  func.func @transform_3(%arg0: i32) -> (i32, i32) {
    %c0_i32 = arith.constant 0 : i32
    %c0_i32_0 = arith.constant 0 : i32
    return %arg0, %c0_i32 : i32, i32
  }
}

</mosaic_0001>

<bundles_post_ra>
// kernel: fcn_forward.1
= control target key start
LH: loop header
LB: loop body
LE: loop exit
PB: predicated region body
PF: predicated region fallthrough
CT: control target
= control target key end

     0   :  { %vm124_vm0 = vcmask 261120   ;;  %s1022_s1 = inlined_call_operand.vmem [shape: f32[32,2176], index: 1, kind: input, shape index: {}]   ;;  %s1023_s0 = inlined_call_operand.vmem [shape: f32[16,32], index: 0, kind: input, shape index: {}]   ;;  %s1024_s2 = inlined_call_operand.vmem [shape: f32[1,2176], index: 2, kind: input, shape index: {}]   ;;  %s1025_s3 = inlined_call_operand.vmem [shape: f32[16,2176], index: 3, kind: output, shape index: {}]  }
   0x1   :  { %v67_v0 = vld [vmem:[%s1022_s1 + $0x198] sm:$0xff]  ;;  %v50_v1 = vld [vmem:[%s1022_s1 + $0x110] sm:$0xff]  ;;  %v69_v2 = vld [vmem:[%s1022_s1 + $0x1a8] sm:$0xff] }
   0x2   :  { %143 = vmatpush.msra.mxu0 %v67_v0  ;;  %594 = vmatpush.msra.mxu1 %v67_v0  ;;  %v70_v3 = vld [vmem:[%s1022_s1 + $0x1b0] sm:$0xff]  ;;  %v52_v4 = vld [vmem:[%s1022_s1 + $0x120] sm:$0xff]  ;;  %v33_v5 = vld [vmem:[%s1022_s1 + $0x88] sm:$0xff] }
   0x3   :  { %189 = vmatpush.msra.mxu2 %v69_v2  ;;  %212 = vmatpush.msra.mxu3 %v70_v3  ;;  %v53_v6 = vld [vmem:[%s1022_s1 + $0x128] sm:$0xff]  ;;  %v35_v7 = vld [vmem:[%s1022_s1 + $0x98] sm:$0xff]  ;;  %v36_v8 = vld [vmem:[%s1022_s1 + $0xa0] sm:$0xff] }
   0x4   :  { %144 = vmatpush.msra.mxu0 %v50_v1  ;;  %595 = vmatpush.msra.mxu1 %v50_v1  ;;  %v16_v9 = vld [vmem:[%s1022_s1] sm:$0xff]  ;;  %v657_v11 = vld [vmem:[%s1023_s0 + $0x8] sm:$0xff]  ;;  %v71_v13 = vld [vmem:[%s1022_s1 + $0x1b8] sm:$0xff] }
   0x5   :  { %190 = vmatpush.msra.mxu2 %v52_v4  ;;  %213 = vmatpush.msra.mxu3 %v53_v6  ;;  %v652_v10 = vld [vmem:[%s1023_s0] sm:$0xff]  ;;  %v18_v14 = vld [vmem:[%s1022_s1 + $0x10] sm:$0xff]  ;;  %v19_v15 = vld [vmem:[%s1022_s1 + $0x18] sm:$0xff] }
   0x6   :  { %145 = vmatpush.msra.mxu0 %v33_v5  ;;  %596 = vmatpush.msra.mxu1 %v33_v5  ;;  %v68_v12 = vld [vmem:[%s1022_s1 + $0x1a0] sm:$0xff]  ;;  %v51_v16 = vld [vmem:[%s1022_s1 + $0x118] sm:$0xff]  ;;  %v54_v17 = vld [vmem:[%s1022_s1 + $0x130] sm:$0xff] }
   0x7   :  { %191 = vmatpush.msra.mxu2 %v35_v7  ;;  %214 = vmatpush.msra.mxu3 %v36_v8  ;;  %v73_v18 = vld [vmem:[%s1022_s1 + $0x1c8] sm:$0xff]  ;;  %v74_v19 = vld [vmem:[%s1022_s1 + $0x1d0] sm:$0xff]  ;;  %v56_v22 = vld [vmem:[%s1022_s1 + $0x140] sm:$0xff] }
   0x8   :  { %146 = vmatpush.msra.mxu0 %v16_v9  ;;  %597 = vmatpush.msra.mxu1 %v16_v9  ;;  %v34_v20 = vld [vmem:[%s1022_s1 + $0x90] sm:$0xff]  ;;  %v37_v21 = vld [vmem:[%s1022_s1 + $0xa8] sm:$0xff]  ;;  %v20_v25 = vld [vmem:[%s1022_s1 + $0x20] sm:$0xff] }
   0x9   :  { %560 = vmatmul.msk.f32.vlgmr.msra.gmra.mxu0 %vm124_vm0, %v652_v10  ;;  %561 = vmatmul.msk.f32.vlgmr.msra.gmra.mxu1 %vm124_vm0, %v657_v11  ;;  %v57_v23 = vld [vmem:[%s1022_s1 + $0x148] sm:$0xff]  ;;  %v72_v26 = vld [vmem:[%s1022_s1 + $0x1c0] sm:$0xff]  ;;  %v75_v27 = vld [vmem:[%s1022_s1 + $0x1d8] sm:$0xff] }
   0xa   :  { %166 = vmatpush.msrb.mxu1 %v68_v12  ;;  %235 = vmatpush.msrb.mxu0 %v71_v13  ;;  %v17_v24 = vld [vmem:[%s1022_s1 + $0x8] sm:$0xff]  ;;  %v40_v28 = vld [vmem:[%s1022_s1 + $0xc0] sm:$0xff]  ;;  %v39_v29 = vld [vmem:[%s1022_s1 + $0xb8] sm:$0xff] }
   0xb   :  { %192 = vmatpush.msra.mxu2 %v18_v14  ;;  %215 = vmatpush.msra.mxu3 %v19_v15  ;;  %v55_v30 = vld [vmem:[%s1022_s1 + $0x138] sm:$0xff]  ;;  %v58_v31 = vld [vmem:[%s1022_s1 + $0x150] sm:$0xff]  ;;  %v41_v35 = vld [vmem:[%s1022_s1 + $0xc8] sm:$0xff] }
   0xc   :  { %167 = vmatpush.msrb.mxu1 %v51_v16  ;;  %564 = vmatmul.msk.f32.vlgmr.msra.gmra.mxu2 %vm124_vm0, %v652_v10  ;;  %v22_v32 = vld [vmem:[%s1022_s1 + $0x30] sm:$0xff]  ;;  %v23_v33 = vld [vmem:[%s1022_s1 + $0x38] sm:$0xff]  ;;  %v77_v36 = vld [vmem:[%s1022_s1 + $0x1e8] sm:$0xff] }
   0xd   :  { %566 = vmatmul.msk.f32.vlgmr.msra.gmra.mxu3 %vm124_vm0, %v652_v10  ;;  %236 = vmatpush.msrb.mxu0 %v54_v17  ;;  %v38_v34 = vld [vmem:[%s1022_s1 + $0xb0] sm:$0xff]  ;;  %v21_v38 = vld [vmem:[%s1022_s1 + $0x28] sm:$0xff]  ;;  %v24_v39 = vld [vmem:[%s1022_s1 + $0x40] sm:$0xff] }
   0xe   :  { %281 = vmatpush.msrb.mxu2 %v73_v18  ;;  %304 = vmatpush.msrb.mxu3 %v74_v19  ;;  %v78_v37 = vld [vmem:[%s1022_s1 + $0x1f0] sm:$0xff]  ;;  %v61_v40 = vld [vmem:[%s1022_s1 + $0x168] sm:$0xff]  ;;  %v60_v41 = vld [vmem:[%s1022_s1 + $0x160] sm:$0xff] }
   0xf   :  { %168 = vmatpush.msrb.mxu1 %v34_v20  ;;  %237 = vmatpush.msrb.mxu0 %v37_v21  ;;  %v76_v42 = vld [vmem:[%s1022_s1 + $0x1e0] sm:$0xff]  ;;  %v79_v43 = vld [vmem:[%s1022_s1 + $0x1f8] sm:$0xff]  ;;  %v62_v47 = vld [vmem:[%s1022_s1 + $0x170] sm:$0xff] }
  0x10   :  { %282 = vmatpush.msrb.mxu2 %v56_v22  ;;  %305 = vmatpush.msrb.mxu3 %v57_v23  ;;  %v43_v44 = vld [vmem:[%s1022_s1 + $0xd8] sm:$0xff]  ;;  %v44_v45 = vld [vmem:[%s1022_s1 + $0xe0] sm:$0xff]  ;;  %v26_v48 = vld [vmem:[%s1022_s1 + $0x50] sm:$0xff] }
  0x11   :  { %169 = vmatpush.msrb.mxu1 %v17_v24  ;;  %238 = vmatpush.msrb.mxu0 %v20_v25  ;;  %v59_v46 = vld [vmem:[%s1022_s1 + $0x158] sm:$0xff]  ;;  %v42_v50 = vld [vmem:[%s1022_s1 + $0xd0] sm:$0xff]  ;;  %v45_v51 = vld [vmem:[%s1022_s1 + $0xe8] sm:$0xff] }
  0x12   :  { %562 = vmatmul.msk.f32.vlgmr.msrb.gmra.mxu1 %vm124_vm0, %v652_v10  ;;  %568 = vmatmul.msk.f32.vlgmr.msrb.gmra.mxu0 %vm124_vm0, %v652_v10  ;;  %v27_v49 = vld [vmem:[%s1022_s1 + $0x58] sm:$0xff]  ;;  %v82_v52 = vld [vmem:[%s1022_s1 + $0x210] sm:$0xff]  ;;  %v81_v53 = vld [vmem:[%s1022_s1 + $0x208] sm:$0xff] }
  0x13   :  { %258 = vmatpush.msra.mxu1 %v72_v26  ;;  %327 = vmatpush.msra.mxu0 %v75_v27  ;;  %v25_v54 = vld [vmem:[%s1022_s1 + $0x48] sm:$0xff]  ;;  %v28_v55 = vld [vmem:[%s1022_s1 + $0x60] sm:$0xff]  ;;  %v83_v59 = vld [vmem:[%s1022_s1 + $0x218] sm:$0xff] }
  0x14   :  { %565 = vmatmul.msk.f32.gmra.mxu2 %vm124_vm0, %v657_v11  ;;  %306 = vmatpush.msrb.mxu3 %v40_v28  ;;  %v64_v56 = vld [vmem:[%s1022_s1 + $0x180] sm:$0xff]  ;;  %v65_v57 = vld [vmem:[%s1022_s1 + $0x188] sm:$0xff]  ;;  %v47_v60 = vld [vmem:[%s1022_s1 + $0xf8] sm:$0xff] }
  0x15   :  { %567 = vmatmul.msk.f32.gmra.mxu3 %vm124_vm0, %v657_v11  ;;  %283 = vmatpush.msrb.mxu2 %v39_v29  ;;  %v80_v58 = vld [vmem:[%s1022_s1 + $0x200] sm:$0xff]  ;;  %v63_v62 = vld [vmem:[%s1022_s1 + $0x178] sm:$0xff]  ;;  %v66_v63 = vld [vmem:[%s1022_s1 + $0x190] sm:$0xff] }
  0x16   :  { %259 = vmatpush.msra.mxu1 %v55_v30  ;;  %328 = vmatpush.msra.mxu0 %v58_v31  ;;  %v48_v61 = vld [vmem:[%s1022_s1 + $0x100] sm:$0xff]  ;;  %v31_v0 = vld [vmem:[%s1022_s1 + $0x78] sm:$0xff]  ;;  %v30_v1 = vld [vmem:[%s1022_s1 + $0x70] sm:$0xff] }
  0x17   :  { %284 = vmatpush.msrb.mxu2 %v22_v32  ;;  %307 = vmatpush.msrb.mxu3 %v23_v33  ;;  %v46_v2 = vld [vmem:[%s1022_s1 + $0xf0] sm:$0xff]  ;;  %v49_v3 = vld [vmem:[%s1022_s1 + $0x108] sm:$0xff]  ;;  %v32_v5 = vld [vmem:[%s1022_s1 + $0x80] sm:$0xff] }
  0x18   :  { %260 = vmatpush.msra.mxu1 %v38_v34  ;;  %329 = vmatpush.msra.mxu0 %v41_v35  ;;  %v29_v4 = vld [vmem:[%s1022_s1 + $0x68] sm:$0xff]  ;;  %v84_v6 = vld [vmem:[%s1024_s2] sm:$0xff] }
  0x19   :  { %373 = vmatpush.msra.mxu2 %v77_v36  ;;  %396 = vmatpush.msra.mxu3 %v78_v37  ;;  %v90_v7 = vperm.slane %v84_v6, 0  ;;  %v91_v13 = vperm.slane %v84_v6, 1  ;;  %v92_v14 = vperm.slane %v84_v6, 2  ;;  %v94_v15 = vperm.slane %v84_v6, 4  ;;  %v928_v32 = vld [vmem:[%s1024_s2 + $0x8] sm:$0xff] }
  0x1a   :  { %563 = vmatmul.msk.f32.gmra.mxu1 %vm124_vm0, %v657_v11  ;;  %569 = vmatmul.msk.f32.gmra.mxu0 %vm124_vm0, %v657_v11  ;;  %v95_v33 = vperm.slane %v84_v6, 5  ;;  %v96_v34 = vperm.slane %v84_v6, 6  ;;  %v97_v35 = vperm.slane %v84_v6, 7  ;;  %v98_v36 = vperm.slane %v928_v32, 0 }
  0x1b   :  { %261 = vmatpush.msra.mxu1 %v21_v38  ;;  %330 = vmatpush.msra.mxu0 %v24_v39 }
  0x1c   :  { %572 = vmatmul.msk.f32.vlgmr.msrb.gmra.mxu2 %vm124_vm0, %v652_v10  ;;  %397 = vmatpush.msra.mxu3 %v61_v40 }
  0x1d   :  { %574 = vmatmul.msk.f32.vlgmr.msrb.gmra.mxu3 %vm124_vm0, %v652_v10  ;;  %374 = vmatpush.msra.mxu2 %v60_v41 }
  0x1e   :  { %350 = vmatpush.msrb.mxu1 %v76_v42  ;;  %419 = vmatpush.msrb.mxu0 %v79_v43 }
  0x1f   :  { %375 = vmatpush.msra.mxu2 %v43_v44  ;;  %398 = vmatpush.msra.mxu3 %v44_v45 }
  0x20   :  { %351 = vmatpush.msrb.mxu1 %v59_v46  ;;  %420 = vmatpush.msrb.mxu0 %v62_v47 }
  0x21   :  { %376 = vmatpush.msra.mxu2 %v26_v48  ;;  %399 = vmatpush.msra.mxu3 %v27_v49 }
  0x22   :  { %570 = vmatmul.msk.f32.vlgmr.msra.gmra.mxu1 %vm124_vm0, %v652_v10  ;;  %576 = vmatmul.msk.f32.vlgmr.msra.gmra.mxu0 %vm124_vm0, %v652_v10 }
  0x23   :  { %352 = vmatpush.msrb.mxu1 %v42_v50  ;;  %421 = vmatpush.msrb.mxu0 %v45_v51 }
  0x24   :  { %573 = vmatmul.msk.f32.gmra.mxu2 %vm124_vm0, %v657_v11  ;;  %488 = vmatpush.msrb.mxu3 %v82_v52 }
  0x25   :  { %575 = vmatmul.msk.f32.gmra.mxu3 %vm124_vm0, %v657_v11  ;;  %465 = vmatpush.msrb.mxu2 %v81_v53  ;;  %v99_v53 = vperm.slane %v928_v32, 1 }
  0x26   :  { %353 = vmatpush.msrb.mxu1 %v25_v54  ;;  %422 = vmatpush.msrb.mxu0 %v28_v55  ;;  %v100_v54 = vperm.slane %v928_v32, 2  ;;  %v101_v55 = vperm.slane %v928_v32, 3 }
  0x27   :  { %466 = vmatpush.msrb.mxu2 %v64_v56  ;;  %489 = vmatpush.msrb.mxu3 %v65_v57  ;;  %v102_v56 = vperm.slane %v928_v32, 4 }
  0x28   :  { %442 = vmatpush.msra.mxu1 %v80_v58  ;;  %511 = vmatpush.msra.mxu0 %v83_v59 }
  0x29   :  { %467 = vmatpush.msrb.mxu2 %v47_v60  ;;  %490 = vmatpush.msrb.mxu3 %v48_v61 }
  0x2a   :  { %571 = vmatmul.msk.f32.gmra.mxu1 %vm124_vm0, %v657_v11  ;;  %577 = vmatmul.msk.f32.gmra.mxu0 %vm124_vm0, %v657_v11 }
  0x2b   :  { %443 = vmatpush.msra.mxu1 %v63_v62  ;;  %512 = vmatpush.msra.mxu0 %v66_v63 }
  0x2c   :  { %580 = vmatmul.msk.f32.vlgmr.msra.gmra.mxu2 %vm124_vm0, %v652_v10  ;;  %491 = vmatpush.msrb.mxu3 %v31_v0 }
  0x2d   :  { %582 = vmatmul.msk.f32.vlgmr.msra.gmra.mxu3 %vm124_vm0, %v652_v10  ;;  %468 = vmatpush.msrb.mxu2 %v30_v1 }
  0x2e   :  { %444 = vmatpush.msra.mxu1 %v46_v2  ;;  %513 = vmatpush.msra.mxu0 %v49_v3 }
  0x30   :  { %445 = vmatpush.msra.mxu1 %v29_v4  ;;  %514 = vmatpush.msra.mxu0 %v32_v5 }
  0x32   :  { %578 = vmatmul.msk.f32.vlgmr.msrb.gmra.mxu1 %vm124_vm0, %v652_v10  ;;  %584 = vmatmul.msk.f32.vlgmr.msrb.gmra.mxu0 %vm124_vm0, %v652_v10 }
  0x34   :  { %581 = vmatmul.msk.f32.gmra.mxu2 %vm124_vm0, %v657_v11 }
  0x35   :  { %583 = vmatmul.msk.f32.gmra.mxu3 %vm124_vm0, %v657_v11 }
  0x3a   :  { %579 = vmatmul.msk.f32.gmra.mxu1 %vm124_vm0, %v657_v11  ;;  %585 = vmatmul.msk.f32.gmra.mxu0 %vm124_vm0, %v657_v11 }
  0x3c   :  { %588 = vmatmul.msk.f32.vlgmr.msrb.gmra.mxu2 %vm124_vm0, %v652_v10 }
  0x3d   :  { %590 = vmatmul.msk.f32.vlgmr.msrb.gmra.mxu3 %vm124_vm0, %v652_v10 }
  0x42   :  { %586 = vmatmul.msk.f32.vlgmr.msra.gmra.mxu1 %vm124_vm0, %v652_v10  ;;  %592 = vmatmul.msk.f32.vlgmr.msra.gmra.mxu0 %vm124_vm0, %v652_v10 }
  0x44   :  { %589 = vmatmul.msk.f32.gmra.mxu2 %vm124_vm0, %v657_v11 }
  0x45   :  { %591 = vmatmul.msk.f32.gmra.mxu3 %vm124_vm0, %v657_v11 }
  0x4a   :  { %587 = vmatmul.msk.f32.gmra.mxu1 %vm124_vm0, %v657_v11  ;;  %593 = vmatmul.msk.f32.gmra.mxu0 %vm124_vm0, %v657_v11  ;;  %v93_v11 = vperm.slane %v84_v6, 3 }
  0x86   :  { %v148_v8 = vpop.f32.mrf.mxu0  ;;  %v151_v9 = vpop.f32.mrf.mxu1 }
  0x87   :  { %v149_v10 = vadd.f32 %v148_v8, %v90_v7  ;;  %v152_v12 = vadd.f32 %v151_v9, %v90_v7  ;;  %v103_v9 = vperm.slane %v928_v32, 5 }
  0x89   :  { %522 = vst [vmem:[%s1025_s3] sm:$0xff] %v149_v10  ;;  %v104_v10 = vperm.slane %v928_v32, 6 }
  0x8a   :  { %539 = vst [vmem:[%s1025_s3 + $0x88] sm:$0xff] %v152_v12  ;;  %v105_v12 = vperm.slane %v928_v32, 7 }
  0x8f   :  { %v171_v16 = vpop.f32.mrf.mxu1  ;;  %v194_v17 = vpop.f32.mrf.mxu2 }
  0x90   :  { %v172_v18 = vadd.f32 %v171_v16, %v91_v13  ;;  %v195_v19 = vadd.f32 %v194_v17, %v92_v14  ;;  %v217_v20 = vpop.f32.mrf.mxu3  ;;  %v240_v21 = vpop.f32.mrf.mxu0 }
  0x91   :  { %v218_v22 = vadd.f32 %v217_v20, %v93_v11  ;;  %v241_v23 = vadd.f32 %v240_v21, %v94_v15 }
  0x92   :  { %523 = vst [vmem:[%s1025_s3 + $0x8] sm:$0xff] %v172_v18 }
  0x93   :  { %524 = vst [vmem:[%s1025_s3 + $0x10] sm:$0xff] %v195_v19 }
  0x94   :  { %525 = vst [vmem:[%s1025_s3 + $0x18] sm:$0xff] %v218_v22 }
  0x95   :  { %526 = vst [vmem:[%s1025_s3 + $0x20] sm:$0xff] %v241_v23 }
  0x97   :  { %v174_v24 = vpop.f32.mrf.mxu1  ;;  %v197_v25 = vpop.f32.mrf.mxu2 }
  0x98   :  { %v175_v26 = vadd.f32 %v174_v24, %v91_v13  ;;  %v198_v27 = vadd.f32 %v197_v25, %v92_v14  ;;  %v220_v28 = vpop.f32.mrf.mxu3  ;;  %v243_v29 = vpop.f32.mrf.mxu0  ;;  %v598_v13 = vld [vmem:[%s1024_s2 + $0x10] ss:$0 sm:$0xff] }
  0x99   :  { %v221_v30 = vadd.f32 %v220_v28, %v93_v11  ;;  %v244_v31 = vadd.f32 %v243_v29, %v94_v15 }
  0x9a   :  { %540 = vst [vmem:[%s1025_s3 + $0x90] sm:$0xff] %v175_v26 }
  0x9b   :  { %541 = vst [vmem:[%s1025_s3 + $0x98] sm:$0xff] %v198_v27 }
  0x9c   :  { %542 = vst [vmem:[%s1025_s3 + $0xa0] sm:$0xff] %v221_v30 }
  0x9d   :  { %543 = vst [vmem:[%s1025_s3 + $0xa8] sm:$0xff] %v244_v31 }
  0x9f   :  { %v263_v37 = vpop.f32.mrf.mxu1  ;;  %v286_v38 = vpop.f32.mrf.mxu2 }
  0xa0   :  { %v264_v39 = vadd.f32 %v263_v37, %v95_v33  ;;  %v287_v40 = vadd.f32 %v286_v38, %v96_v34  ;;  %v309_v41 = vpop.f32.mrf.mxu3  ;;  %v332_v42 = vpop.f32.mrf.mxu0 }
  0xa1   :  { %v310_v43 = vadd.f32 %v309_v41, %v97_v35  ;;  %v333_v44 = vadd.f32 %v332_v42, %v98_v36 }
  0xa2   :  { %527 = vst [vmem:[%s1025_s3 + $0x28] sm:$0xff] %v264_v39 }
  0xa3   :  { %528 = vst [vmem:[%s1025_s3 + $0x30] sm:$0xff] %v287_v40 }
  0xa4   :  { %529 = vst [vmem:[%s1025_s3 + $0x38] sm:$0xff] %v310_v43 }
  0xa5   :  { %530 = vst [vmem:[%s1025_s3 + $0x40] sm:$0xff] %v333_v44 }
  0xa7   :  { %v266_v45 = vpop.f32.mrf.mxu1  ;;  %v289_v46 = vpop.f32.mrf.mxu2 }
  0xa8   :  { %v267_v47 = vadd.f32 %v266_v45, %v95_v33  ;;  %v290_v48 = vadd.f32 %v289_v46, %v96_v34  ;;  %v312_v49 = vpop.f32.mrf.mxu3  ;;  %v335_v50 = vpop.f32.mrf.mxu0 }
  0xa9   :  { %v313_v51 = vadd.f32 %v312_v49, %v97_v35  ;;  %v336_v52 = vadd.f32 %v335_v50, %v98_v36 }
  0xaa   :  { %544 = vst [vmem:[%s1025_s3 + $0xb0] sm:$0xff] %v267_v47 }
  0xab   :  { %545 = vst [vmem:[%s1025_s3 + $0xb8] sm:$0xff] %v290_v48 }
  0xac   :  { %546 = vst [vmem:[%s1025_s3 + $0xc0] sm:$0xff] %v313_v51 }
  0xad   :  { %547 = vst [vmem:[%s1025_s3 + $0xc8] sm:$0xff] %v336_v52 }
  0xaf   :  { %v355_v57 = vpop.f32.mrf.mxu1  ;;  %v378_v58 = vpop.f32.mrf.mxu2 }
  0xb0   :  { %v356_v59 = vadd.f32 %v355_v57, %v99_v53  ;;  %v379_v60 = vadd.f32 %v378_v58, %v100_v54  ;;  %v401_v61 = vpop.f32.mrf.mxu3  ;;  %v424_v62 = vpop.f32.mrf.mxu0 }
  0xb1   :  { %v402_v63 = vadd.f32 %v401_v61, %v101_v55  ;;  %v425_v0 = vadd.f32 %v424_v62, %v102_v56 }
  0xb2   :  { %531 = vst [vmem:[%s1025_s3 + $0x48] sm:$0xff] %v356_v59 }
  0xb3   :  { %532 = vst [vmem:[%s1025_s3 + $0x50] sm:$0xff] %v379_v60 }
  0xb4   :  { %533 = vst [vmem:[%s1025_s3 + $0x58] sm:$0xff] %v402_v63 }
  0xb5   :  { %534 = vst [vmem:[%s1025_s3 + $0x60] sm:$0xff] %v425_v0 }
  0xb7   :  { %v358_v1 = vpop.f32.mrf.mxu1  ;;  %v381_v2 = vpop.f32.mrf.mxu2 }
  0xb8   :  { %v359_v3 = vadd.f32 %v358_v1, %v99_v53  ;;  %v382_v4 = vadd.f32 %v381_v2, %v100_v54  ;;  %v404_v5 = vpop.f32.mrf.mxu3  ;;  %v427_v6 = vpop.f32.mrf.mxu0 }
  0xb9   :  { %v405_v7 = vadd.f32 %v404_v5, %v101_v55  ;;  %v428_v8 = vadd.f32 %v427_v6, %v102_v56 }
  0xba   :  { %548 = vst [vmem:[%s1025_s3 + $0xd0] sm:$0xff] %v359_v3 }
  0xbb   :  { %549 = vst [vmem:[%s1025_s3 + $0xd8] sm:$0xff] %v382_v4 }
  0xbc   :  { %550 = vst [vmem:[%s1025_s3 + $0xe0] sm:$0xff] %v405_v7 }
  0xbd   :  { %551 = vst [vmem:[%s1025_s3 + $0xe8] sm:$0xff] %v428_v8 }
  0xbf   :  { %v447_v14 = vpop.f32.mrf.mxu1  ;;  %v470_v11 = vpop.f32.mrf.mxu2 }
  0xc0   :  { %v448_v15 = vadd.f32 %v447_v14, %v103_v9  ;;  %v471_v16 = vadd.f32 %v470_v11, %v104_v10  ;;  %v493_v17 = vpop.f32.mrf.mxu3  ;;  %v516_v18 = vpop.f32.mrf.mxu0 }
  0xc1   :  { %v494_v19 = vadd.f32 %v493_v17, %v105_v12  ;;  %v517_v20 = vadd.f32 %v598_v13, %v516_v18 }
  0xc2   :  { %535 = vst [vmem:[%s1025_s3 + $0x68] sm:$0xff] %v448_v15 }
  0xc3   :  { %536 = vst [vmem:[%s1025_s3 + $0x70] sm:$0xff] %v471_v16 }
  0xc4   :  { %537 = vst [vmem:[%s1025_s3 + $0x78] sm:$0xff] %v494_v19 }
  0xc5   :  { %538 = vst [vmem:[%s1025_s3 + $0x80] sm:$0xff] %v517_v20 }
  0xc7   :  { %v450_v21 = vpop.f32.mrf.mxu1  ;;  %v473_v22 = vpop.f32.mrf.mxu2 }
  0xc8   :  { %v451_v23 = vadd.f32 %v450_v21, %v103_v9  ;;  %v474_v24 = vadd.f32 %v473_v22, %v104_v10  ;;  %v496_v25 = vpop.f32.mrf.mxu3  ;;  %v519_v26 = vpop.f32.mrf.mxu0 }
  0xc9   :  { %v497_v27 = vadd.f32 %v496_v25, %v105_v12  ;;  %v520_v28 = vadd.f32 %v598_v13, %v519_v26 }
  0xca   :  { %552 = vst [vmem:[%s1025_s3 + $0xf0] sm:$0xff] %v451_v23 }
  0xcb   :  { %553 = vst [vmem:[%s1025_s3 + $0xf8] sm:$0xff] %v474_v24 }
  0xcc   :  { %554 = vst [vmem:[%s1025_s3 + $0x100] sm:$0xff] %v497_v27 }
  0xcd   :  { %555 = vst [vmem:[%s1025_s3 + $0x108] sm:$0xff] %v520_v28 }

</bundles_post_ra>
